<compile_context>
chip_gen: v6e
topology: v6e:2x2x1
jax: 0.10.0
libtpu: 0.0.40
codegen_flags: <defaults>
</compile_context>

<pallas_src>
import functools
import math

import jax
import jax.numpy as jnp
from jax.experimental import pallas as pl
from jax.experimental.pallas import tpu as pltpu


def _round_up(x, m):
    return ((x + m - 1) // m) * m


def _llama3_inv_freq(dim, base, factor, low_freq_factor, high_freq_factor,
                     old_context_len):
    """Plain-JAX (fp32) Llama3 rope-scaling of inv_freq. Shape: (dim//2,)."""
    exponents = jnp.arange(0, dim, 2, dtype=jnp.int32).astype(jnp.float32) / dim
    inv_freq = 1.0 / (base ** exponents)                     # (dim//2,)
    low_freq_wavelen = old_context_len / low_freq_factor
    high_freq_wavelen = old_context_len / high_freq_factor
    wavelen = 2.0 * math.pi / inv_freq
    smooth = (old_context_len / wavelen - low_freq_factor) / (
        high_freq_factor - low_freq_factor)
    scaled = (1.0 - smooth) * inv_freq / factor + smooth * inv_freq
    new_freq = jnp.where(
        wavelen < high_freq_wavelen,
        inv_freq,
        jnp.where(wavelen > low_freq_wavelen, inv_freq / factor, scaled),
    )
    return new_freq.astype(jnp.float32)


def _rope_kernel(pos_ref, inv_ref, cos_ref, sin_ref, *, fold, dim):
    # pos_ref: (TM, fold) int32 ; inv_ref: (1, dim//2) fp32
    # Output refs: (TM, fold*dim) -- `fold` consecutive logical rows packed
    # along lanes so the two stores below are full-width and lane-dense.
    del dim
    inv = inv_ref[...]                                    # (1, half) fp32
    pos = pos_ref[...].astype(jnp.float32)                # (TM, fold) fp32
    cos_parts = []
    sin_parts = []
    for j in range(fold):                                 # fold is 1 or 2: static
        emb = pos[:, j:j + 1] * inv                       # (TM, half) broadcast
        c = jnp.cos(emb)                                  # transcendental on half lanes
        s = jnp.sin(emb)
        cos_parts += [c, c]                               # cat(freqs, freqs)
        sin_parts += [s, s]
    # Lane concat only (no extra transcendental work); exactly ONE full-width
    # store per output (important on v5e's single vector-store slot).
    cos_ref[...] = jnp.concatenate(cos_parts, axis=-1).astype(cos_ref.dtype)
    sin_ref[...] = jnp.concatenate(sin_parts, axis=-1).astype(sin_ref.dtype)


def llama3_rotary_embedding(x, position_ids, *, dim,
                            base=500000.0, factor=8.0,
                            low_freq_factor=1.0, high_freq_factor=4.0,
                            original_max_position_embeddings=8192,
                            block_rows=4096):
    """Returns (cos, sin), each (B, S, dim) in x.dtype."""
    B, S = position_ids.shape
    N = B * S
    half = dim // 2
    out_dtype = x.dtype

    inv_half = _llama3_inv_freq(
        dim, base, factor, low_freq_factor, high_freq_factor,
        original_max_position_embeddings).reshape(1, half)   # (1, half) fp32

    # Lane fold: pack `fold` consecutive (B*S) rows into one 128-lane output
    # row when dim < 128, so in-kernel stores are never masked partial stores.
    if dim < 128 and 128 % dim == 0 and N % (128 // dim) == 0:
        fold = 128 // dim
    else:
        fold = 1
    n_rows = N // fold
    width = fold * dim

    pos = position_ids.reshape(n_rows, fold).astype(jnp.int32)

    # Row tile: big (amortize ~0.35us/step overhead) but capped so the grid has
    # >= 2 steps whenever there is enough work (v7x 2-TC split of 'parallel').
    tm = min(_round_up(max(block_rows // fold, 8), 8),
             _round_up(pl.cdiv(n_rows, 2), 8))
    tm = max(tm, 8)
    grid = (pl.cdiv(n_rows, tm),)   # ragged last block is clipped; no padding,
                                    # no post-kernel slice copy.

    kernel = functools.partial(_rope_kernel, fold=fold, dim=dim)
    cos, sin = pl.pallas_call(
        kernel,
        out_shape=(
            jax.ShapeDtypeStruct((n_rows, width), out_dtype),
            jax.ShapeDtypeStruct((n_rows, width), out_dtype),
        ),
        grid=grid,
        in_specs=[
            pl.BlockSpec((tm, fold), lambda i: (i, 0)),    # positions (folded)
            pl.BlockSpec((1, half), lambda i: (0, 0)),     # inv_freq (resident)
        ],
        out_specs=(
            pl.BlockSpec((tm, width), lambda i: (i, 0)),
            pl.BlockSpec((tm, width), lambda i: (i, 0)),
        ),
        compiler_params=pltpu.CompilerParams(
            dimension_semantics=("parallel",)),
    )(pos, inv_half)

    # Free row-major reshape: folded rows are consecutive original rows.
    cos = cos.reshape(B, S, dim)
    sin = sin.reshape(B, S, dim)
    return cos, sin


def _reference(x, position_ids, dim):
    """Pure-JAX reference mirroring the PyTorch forward (fp32 math)."""
    inv_freq = _llama3_inv_freq(dim, 500000.0, 8.0, 1.0, 4.0, 8192)
    pos = position_ids.astype(jnp.float32)
    freqs = pos[:, :, None] * inv_freq[None, None, :]     # (B, S, dim//2)
    emb = jnp.concatenate([freqs, freqs], axis=-1)        # (B, S, dim)
    return jnp.cos(emb).astype(x.dtype), jnp.sin(emb).astype(x.dtype)


def _check(B, S, dim, block_rows=4096):
    key = jax.random.PRNGKey(0)
    x = jax.random.normal(key, (B, S, dim), dtype=jnp.bfloat16)
    position_ids = jnp.tile(jnp.arange(S, dtype=jnp.int32)[None, :], (B, 1))

    cos, sin = llama3_rotary_embedding(x, position_ids, dim=dim,
                                       block_rows=block_rows)
    jax.block_until_ready((cos, sin))

    cos_ref, sin_ref = _reference(x, position_ids, dim)
    assert cos.shape == (B, S, dim) and sin.shape == (B, S, dim)
    assert cos.dtype == x.dtype and sin.dtype == x.dtype
    assert jnp.allclose(cos.astype(jnp.float32), cos_ref.astype(jnp.float32),
                        atol=1e-2, rtol=1e-2)
    assert jnp.allclose(sin.astype(jnp.float32), sin_ref.astype(jnp.float32),
                        atol=1e-2, rtol=1e-2)


if __name__ == "__main__":
    # Llama3 head_dim=128 (lane-dense already), small seq: 2-step grid.
    _check(B=2, S=8, dim=128)
    # head_dim=64: exercises the lane-fold path (fold=2) + multi-step grid.
    _check(B=2, S=256, dim=64, block_rows=256)
    # Ragged row count: exercises clipped last block (no padding, no slice).
    _check(B=2, S=12, dim=128)
    # Larger shape with the default big tile (tm=2048, grid=2).
    _check(B=2, S=2048, dim=128)
    print("KERNEL_OK")
</pallas_src>

<mosaic_0001>
module attributes {stable_mosaic.version = 11 : i64} {
  func.func @_rope_kernel(%arg0: i32, %arg1: memref<8x1xi32, #tpu.memory_space<vmem>>, %arg2: memref<1x64xf32, #tpu.memory_space<vmem>>, %arg3: memref<8x128xbf16, #tpu.memory_space<vmem>>, %arg4: memref<8x128xbf16, #tpu.memory_space<vmem>>) attributes {dimension_semantics = [#tpu.dimension_semantics<parallel>], iteration_bounds = array<i64: 2>, scalar_prefetch = 0 : i64, scratch_operands = 0 : i64, tpu.core_type = #tpu.core_type<tc>, window_params = [{transform_indices = @transform_0, window_bounds = array<i64: 8, 1>}, {pipeline_mode = #tpu.pipeline_mode<synchronous>, transform_indices = @transform_1, window_bounds = array<i64: 1, 64>}, {transform_indices = @transform_2, window_bounds = array<i64: 8, 128>}, {transform_indices = @transform_3, window_bounds = array<i64: 8, 128>}]} {
    %c0 = arith.constant 0 : index
    %c0_0 = arith.constant 0 : index
    %0 = vector.load %arg2[%c0, %c0_0] : memref<1x64xf32, #tpu.memory_space<vmem>>, vector<1x64xf32>
    %c0_1 = arith.constant 0 : index
    %c0_2 = arith.constant 0 : index
    %1 = vector.load %arg1[%c0_1, %c0_2] : memref<8x1xi32, #tpu.memory_space<vmem>>, vector<8x1xi32>
    %2 = arith.sitofp %1 : vector<8x1xi32> to vector<8x1xf32>
    %3 = vector.broadcast %2 : vector<8x1xf32> to vector<8x64xf32>
    %4 = vector.broadcast %0 : vector<1x64xf32> to vector<8x64xf32>
    %5 = arith.mulf %3, %4 : vector<8x64xf32>
    %6 = math.cos %5 : vector<8x64xf32>
    %7 = math.sin %5 : vector<8x64xf32>
    %8 = tpu.concatenate %6, %6 in 1 : vector<8x64xf32>, vector<8x64xf32> -> vector<8x128xf32>
    %9 = arith.truncf %8 : vector<8x128xf32> to vector<8x128xbf16>
    %c0_3 = arith.constant 0 : index
    %c0_4 = arith.constant 0 : index
    %10 = vector.load %arg3[%c0_3, %c0_4] : memref<8x128xbf16, #tpu.memory_space<vmem>>, vector<8x128xbf16>
    tpu.vector_store %arg3[%c0_3, %c0_4], %9 {strides = array<i32>} : memref<8x128xbf16, #tpu.memory_space<vmem>>, vector<8x128xbf16>,
    %11 = tpu.concatenate %7, %7 in 1 : vector<8x64xf32>, vector<8x64xf32> -> vector<8x128xf32>
    %12 = arith.truncf %11 : vector<8x128xf32> to vector<8x128xbf16>
    %c0_5 = arith.constant 0 : index
    %c0_6 = arith.constant 0 : index
    %13 = vector.load %arg4[%c0_5, %c0_6] : memref<8x128xbf16, #tpu.memory_space<vmem>>, vector<8x128xbf16>
    tpu.vector_store %arg4[%c0_5, %c0_6], %12 {strides = array<i32>} : memref<8x128xbf16, #tpu.memory_space<vmem>>, vector<8x128xbf16>,
    return
  }
  func.func @transform_0(%arg0: i32) -> (i32, i32) {
    %c0_i32 = arith.constant 0 : i32
    %c0_i32_0 = arith.constant 0 : i32
    return %arg0, %c0_i32 : i32, i32
  }
  func.func @transform_1(%arg0: i32) -> (i32, i32) {
    %c0_i32 = arith.constant 0 : i32
    %c0_i32_0 = arith.constant 0 : i32
    %c0_i32_1 = arith.constant 0 : i32
    return %c0_i32, %c0_i32_0 : i32, i32
  }
  func.func @transform_2(%arg0: i32) -> (i32, i32) {
    %c0_i32 = arith.constant 0 : i32
    %c0_i32_0 = arith.constant 0 : i32
    return %arg0, %c0_i32 : i32, i32
  }
  func.func @transform_3(%arg0: i32) -> (i32, i32) {
    %c0_i32 = arith.constant 0 : i32
    %c0_i32_0 = arith.constant 0 : i32
    return %arg0, %c0_i32 : i32, i32
  }
}

</mosaic_0001>

<bundles_post_ra>
// kernel: tpu_custom_call.1
= control target key start
LH: loop header
LB: loop body
LE: loop exit
PB: predicated region body
PF: predicated region fallthrough
CT: control target
= control target key end

     0   :  { %9 = vsyncpa [#allocation3], 0  ;;  %s902_s0 = inlined_call_operand.vmem [shape: s32[16,1], index: 0, kind: input, shape index: {}]   ;;  %s903_s1 = inlined_call_operand.vmem [shape: f32[1,64], index: 1, kind: input, shape index: {}]   ;;  %s904_s2 = inlined_call_operand.hbm [shape: bf16[16,128], index: 2, kind: output, shape index: {0}]   ;;  %s905_s3 = inlined_call_operand.hbm [shape: bf16[16,128], index: 3, kind: output, shape index: {1}]  }
   0x1   :  { %11 = vsyncpa [#allocation3 + $0x1], 0 }
   0x2   :  { %12 = vsyncpa [#allocation5], 0 }
   0x3   :  { %14 = vsyncpa [#allocation5 + $0x1], 0  ;;  %s747_s12 = smov 0   ;;  %s749_s13 = smov 0  }
   0x4   :  { %s751_s14 = smov 0   ;;  %s753_s15 = smov 0  }
   0x5 LB: > { %s768_s16 = sadd.s32 4294967295, %s715_s15   ;;  %s537_s17 = sadd.s32 4294967294, %s715_s15   ;;  %s715_s15 = sphi %s753_s15, %s911_s15   ;;  %s711_s14 = sphi %s751_s14, %s910_s14   ;;  %s707_s13 = sphi %s749_s13, %s909_s13   ;;  %s703_s12 = sphi %s747_s12, %s908_s12  }
   0x6   : > { %s772_s18 = sadd.s32 1, %s715_s15   ;;  %s74_s19 = sadd.s32 1, %s711_s14 }
   0x7   : > { %s71_s20 = ssub.s32 %s715_s15, %s772_s18  ;;  %p84_p0 = scmp.ne.s32.totalorder %s711_s14, %s707_s13 }
   0x8   : > { %p72_p1 = scmp.eq.s32.totalorder %s71_s20, 0  ;;  %p85_p2 = scmp.eq.s32.totalorder %s768_s16, 1 }
   0x9   : > { %p90_p3 = scmp.ne.s32.totalorder %s707_s13, %s703_s12  ;;  %p91_p4 = scmp.eq.s32.totalorder %s537_s17, 1 }
   0xa   : > { %s783_s21 = scalar_select %p72_p1, %s711_s14, %s74_s19  }
   0xb   : > { %p785_p5 = por %p85_p2, %p84_p0  ;;  %p789_p6 = por %p91_p4, %p90_p3 }
   0xc   : > { %p540_p7 = scmp.ge.s32.totalorder %s715_s15, 1  ;;  %p145_p8 = scmp.lt.s32.totalorder %s715_s15, 3 }
   0xe   : > { %p146_p9 = pnand %p540_p7, %p145_p8 }
   0xf   : > { %p173_p10 = scmp.lt.s32.totalorder (!%p146_p9), %s768_s16, 1  ;;  %s724_s4 = smov (!%p146_p9), 64  }
  0x10   : > { %149 = sbr.rel (%p146_p9) target bundleno = 393 (0x189), region = 28  ;;  %s825_s5 = sand.u32 (!%p146_p9), 1, %s707_s13  }
  0x11   : > { %s541_s6 = sshll.u32 (!%p146_p9), %s825_s5, 2  ;;  %s555_s7 = sshll.u32 (!%p146_p9), %s768_s16, 6 }
  0x12   : > { %s165_s8 = scalar_lea.vmem (!%p146_p9), [#allocation2], %s541_s6  ;;  %s172_s10 = scalar_lea.vmem (!%p146_p9), [#allocation4], %s541_s6 }
  0x13   : > { %s433_s9 = sshll.u32 (!%p146_p9), %s165_s8, 4  ;;  %s446_s11 = sshll.u32 (!%p146_p9), %s172_s10, 4  ;;  %s834_s9 = int_to_ptr.vmem [resolvable:$true] %s433_s9  ;;  %s841_s11 = int_to_ptr.vmem [resolvable:$true] %s446_s11 }
  0x14   : > { %s832_s20 = scalar_lea.hbm (!%p146_p9), %s904_s2, %s555_s7  ;;  %s415_s26 = scalar_lea.sflag (!%p146_p9), [#allocation3], %s825_s5 }
  0x15   : > { %v717_v0 = vmov 0   ;;  %s174_s24 = scalar_select %p173_p10, %s768_s16, 1  ;;  %v544_v3 = vld [vmem:[%s903_s1] ss:$0 sm:$0xff]  ;;  %v718_v16 = vmov 683565275  }
  0x16   : > { %615 = vset.pattern.permute.xlu0 %v717_v0  ;;  %v719_v18 = vmov 2475754826   ;;  %v720_v21 = vmov 2131351028   ;;  %v721_v24 = vmov 2102212464  }
  0x17   : > { %s543_s25 = sshll.u32 %s174_s24, 3  ;;  %v722_v27 = vmov 920167782   ;;  %v723_v30 = vmov 1326507024   ;;  %s625_s27 = scalar_lea.vmem %s834_s9, 64 }
  0x18   : > { %s176_s28 = scalar_lea.vmem %s902_s0, %s543_s25  ;;  %s839_s25 = scalar_lea.hbm %s905_s3, %s555_s7 }
  0x19   : > { %v178_v1 = vld [vmem:[%s176_s28] sm:$0xff]  ;;  %p626_p11 = scmp.ne.s32.totalorder %s834_s9, %s625_s27  ;;  %s725_s28 = smov [#allocation2]  }
  0x1a   : > { %v179_v2 = vcvt.s32.f32 %v178_v1  ;;  %s629_s29 = sshll.u32 %s725_s28, 4  ;;  %s630_s29 = int_to_ptr.vmem [resolvable:$false] %s629_s29 }
  0x1b   : > { %p627_p12 = pnand %p626_p11, %p785_p5  ;;  %s631_s30 = scalar_lea.vmem %s630_s29, 128 }
  0x1c   : > { %182 = vperm.xlu0 %615, %v179_v2   ;;  %p632_p0 = scmp.lt.s32.totalorder %s834_s9, %s630_s29  ;;  %p633_p1 = scmp.lt.s32.totalorder %s631_s30, %s625_s27 }
  0x1d   : > { %p628_p13 = pneg %p627_p12 }
  0x1e   : > { %p634_p2 = por %p633_p1, %p632_p0 }
  0x20   : > { %p635_p3 = pnand %p634_p2, %p628_p13 }
  0x97   : > { %v183_v4 = vpop.permute.xlu0 %182 }
  0x98   : > { %v803_v5 = vmul.f32 %v544_v3, %v183_v4 }
  0x9a   : > { %v195_v6 = vand.u32 2139095040, %v803_v5  ;;  %v192_v10 = vand.u32 2147483647, %v803_v5  ;;  %vm194_vm7 = vcmp.lt.s32.totalorder %v803_v5, 0  ;;  %vm284_vm15 = vweird.f32 %v803_v5 }
  0x9c   : > { %v196_v7 = vshrl.u32 %v195_v6, 23  ;;  %v199_v13 = vand.u32 8388607, %v192_v10  ;;  %vm193_vm8 = vcmp.le.f32.partialorder %v192_v10, 0.7853982 }
  0x9e   : > { %v545_v8 = vadd.s32 4294967169, %v196_v7  ;;  %v200_v32 = vor.u32 8388608, %v199_v13 }
  0xa0   : > { %v202_v9 = vadd.s32 1, %v545_v8  ;;  %v240_v46 = vshll.u32 %v200_v32, 8 }
  0xa2   : > { %vm203_vm0 = vcmp.gt.s32.totalorder %v202_v9, 0 }
  0xa3   : > { %v204_v11 = vsel %vm203_vm0, %v202_v9, 0  ;;  %vm403_vm0 = vcmask 523264  }
  0xa4   : > { %v206_v12 = vand.u32 31, %v204_v11  ;;  %v205_v15 = vshrl.u32 %v204_v11, 5 }
  0xa6   : > { %v207_v14 = vsub.s32 32, %v206_v12  ;;  %v209_v17 = vshll.u32 %v718_v16, %v206_v12  ;;  %v212_v19 = vshll.u32 %v719_v18, %v206_v12  ;;  %v215_v23 = vshll.u32 %v720_v21, %v206_v12 }
  0xa7   : > { %v218_v26 = vshll.u32 %v721_v24, %v206_v12  ;;  %v221_v29 = vshll.u32 %v722_v27, %v206_v12  ;;  %vm224_vm1 = vcmp.lt.s32.totalorder %v205_v15, 1  ;;  %vm227_vm2 = vcmp.lt.s32.totalorder %v205_v15, 4 }
  0xa8   : > { %v210_v20 = vshrl.u32 %v719_v18, %v207_v14  ;;  %v213_v22 = vshrl.u32 %v720_v21, %v207_v14  ;;  %v216_v25 = vshrl.u32 %v721_v24, %v207_v14  ;;  %v219_v28 = vshrl.u32 %v722_v27, %v207_v14 }
  0xa9   : > { %v222_v31 = vshrl.u32 %v723_v30, %v207_v14  ;;  %v208_v41 = vshrl.u32 %v718_v16, %v207_v14  ;;  %vm226_vm3 = vcmp.lt.s32.totalorder %v205_v15, 3  ;;  %vm225_vm4 = vcmp.lt.s32.totalorder %v205_v15, 2 }
  0xaa   : > { %v211_v33 = vor.u32 %v210_v20, %v209_v17  ;;  %v214_v34 = vor.u32 %v213_v22, %v212_v19  ;;  %v217_v35 = vor.u32 %v216_v25, %v215_v23  ;;  %v220_v36 = vor.u32 %v219_v28, %v218_v26 }
  0xab   : > { %v223_v37 = vor.u32 %v222_v31, %v221_v29 }
  0xac   : > { %v229_v38 = vsel %vm227_vm2, %v217_v35, 2102212464  ;;  %v232_v39 = vsel %vm224_vm1, %v211_v33, %v214_v34  ;;  %v236_v40 = vsel %vm224_vm1, %v214_v34, %v217_v35  ;;  %v233_v42 = vsel %vm227_vm2, %v220_v36, 920167782 }
  0xad   : > { %v237_v43 = vsel %vm227_vm2, %v223_v37, 1326507024  ;;  %v234_v44 = vsel %vm226_vm3, %v217_v35, %v233_v42  ;;  %v228_v47 = vsel %vm224_vm1, %v208_v41, %v211_v33  ;;  %v230_v48 = vsel %vm226_vm3, %v214_v34, %v229_v38 }
  0xae   : > { %v238_v45 = vsel %vm226_vm3, %v220_v36, %v237_v43  ;;  %v235_v49 = vsel %vm225_vm4, %v232_v39, %v234_v44  ;;  %v231_v55 = vsel %vm225_vm4, %v228_v47, %v230_v48 }
  0xaf   : > { %v239_v50 = vsel %vm225_vm4, %v236_v40, %v238_v45  ;;  %v812_v53 = vmul.u32.u64.low %v240_v46, %v235_v49  ;;  %v813_v54 = vmul.u32.u64.high %v240_v46, %v235_v49, %v812_v53  ;;  %v247_v57 = vmul.u32 %v240_v46, %v231_v55 }
  0xb0   : > { %v809_v51 = vmul.u32.u64.low %v240_v46, %v239_v50  ;;  %v810_v52 = vmul.u32.u64.high %v240_v46, %v239_v50, %v809_v51 }
  0xb1   : > { %v250_v56 = vadd.s32 1, %v813_v54 }
  0xb2   : > { %vm249_vm5 = vc.u32 %v810_v52, %v812_v53  ;;  %v248_v6 = vadd.s32 %v812_v53, %v810_v52 }
  0xb3   : > { %v251_v58 = vsel %vm249_vm5, %v250_v56, %v813_v54 }
  0xb4   : > { %v252_v59 = vadd.s32 %v251_v58, %v247_v57 }
  0xb6   : > { %v253_v60 = vadd.s32 536870912, %v252_v59 }
  0xb8   : > { %v254_v61 = vshrl.u32 %v253_v60, 30 }
  0xba   : > { %v255_v62 = vshll.u32 %v254_v61, 30  ;;  %v278_v20 = vsub.s32 4, %v254_v61 }
  0xbc   : > { %v256_v63 = vsub.s32 %v252_v59, %v255_v62  ;;  %v279_v23 = vsel %vm194_vm7, %v278_v20, %v254_v61 }
  0xbd   : > { %v281_v24 = vsel %vm193_vm8, 0, %v279_v23 }
  0xbe   : > { %v258_v0 = vsub.s32 0, %v256_v63  ;;  %v388_v25 = vadd.s32 3, %v281_v24  ;;  %v285_v26 = vand.u32 3, %v281_v24 }
  0xc0   : > { %v546_v1 = vmin.u32 %v258_v0, %v256_v63  ;;  %v389_v27 = vand.u32 3, %v388_v25  ;;  %vm290_vm9 = vcmp.eq.s32.totalorder %v285_v26, 2  ;;  %vm287_vm11 = vcmp.eq.s32.totalorder %v285_v26, 0 }
  0xc1   : > { %vm286_vm13 = vcmp.lt.s32.totalorder %v285_v26, 2 }
  0xc2   : > { %v260_v2 = vclz %v546_v1  ;;  %vm394_vm10 = vcmp.eq.s32.totalorder %v389_v27, 2  ;;  %vm391_vm12 = vcmp.eq.s32.totalorder %v389_v27, 0  ;;  %vm390_vm14 = vcmp.lt.s32.totalorder %v389_v27, 2 }
  0xc4   : > { %v547_v3 = vadd.s32 4294967294, %v260_v2 }
  0xc6   : > { %vm548_vm6 = vcmp.lt.s32.totalorder %v547_v3, 0 }
  0xc7   : > { %v263_v4 = vsel %vm548_vm6, 0, %v547_v3 }
  0xc8   : > { %v264_v7 = vsub.s32 32, %v263_v4  ;;  %v268_v8 = vsub.s32 4294967266, %v263_v4  ;;  %v265_v9 = vshll.u32 %v256_v63, %v263_v4 }
  0xca   : > { %v266_v11 = vshrl.u32 %v248_v6, %v264_v7  ;;  %v269_v12 = vadd.s32 127, %v268_v8 }
  0xcc   : > { %v267_v13 = vor.u32 %v266_v11, %v265_v9  ;;  %v270_v14 = vshll.u32 %v269_v12, 23 }
  0xce   : > { %v271_v15 = vor.u32 4788187, %v270_v14  ;;  %v274_v17 = vcvt.s32.f32 %v267_v13 }
  0xd0   : > { %v272_v16 = vand.u32 2147483647, %v271_v15 }
  0xd2   : > { %v275_v18 = vmul.f32 %v274_v17, %v272_v16 }
  0xd4   : > { %v276_v19 = vxor.u32 2147483648, %v275_v18 }
  0xd6   : > { %v277_v21 = vsel %vm194_vm7, %v276_v19, %v275_v18 }
  0xd7   : > { %v280_v22 = vsel %vm193_vm8, %v803_v5, %v277_v21 }
  0xd8   : > { %621 = vcosq.f32 %v280_v22 }
  0xd9   : > { %623 = vsinq.f32 %v280_v22 }
  0xe5   : > { %v622_v28 = vpop.eup %621 }
  0xe6   : > { %v624_v29 = vpop.eup %623  ;;  %v291_v30 = vxor.u32 2147483648, %v622_v28 }
  0xe7   : > { %v288_v31 = vxor.u32 2147483648, %v624_v29 }
  0xe8   : > { %v292_v32 = vsel %vm290_vm9, %v291_v30, %v624_v29  ;;  %v396_v10 = vsel %vm394_vm10, %v291_v30, %v624_v29 }
  0xe9   : > { %v289_v33 = vsel %vm287_vm11, %v622_v28, %v288_v31  ;;  %v393_v34 = vsel %vm391_vm12, %v622_v28, %v288_v31 }
  0xea   : > { %v293_v35 = vsel %vm286_vm13, %v289_v33, %v292_v32  ;;  %v397_v36 = vsel %vm390_vm14, %v393_v34, %v396_v10 }
  0xeb   : > { %v294_v37 = vsel %vm284_vm15, nan, %v293_v35  ;;  %v398_v38 = vsel %vm284_vm15, nan, %v397_v36 }
  0xec   : > { %v616_v39 = vpack.i.bf16 %v398_v38, %v294_v37 }
  0xee   : > { %617 = vrot.lane.b32.xlu0 %v616_v39, %s724_s4 }
 0x160   : > { %v618_v40 = vpop.permute.xlu0 %617 }
 0x161   : > { %v620_v41 = vunpack.i.h.bf16 %v618_v40  ;;  %v619_v42 = vunpack.i.l.bf16 %v618_v40 }
 0x163   : > { %v411_v5 = vsel %vm403_vm0, %v398_v38, %v620_v41  ;;  %v404_v43 = vsel %vm403_vm0, %v294_v37, %v619_v42 }
 0x164   : > { %v412_v44 = vpack.c.bf16 %v411_v5, %v411_v5  ;;  %v405_v45 = vpack.c.bf16 %v404_v43, %v404_v43 }
 0x166   : > { %406 = vst [vmem:[%s165_s8] sm:$0xf] %v405_v45  ;;  %413 = vst [vmem:[%s172_s10] sm:$0xf] %v412_v44 }
 0x167   : > { %638 = shalt.err (!%p635_p3)
}
 0x168   : > { %s639_s4 = scalar_lea.hbm %s832_s20, 64  ;;  %s643_s8 = scalar_lea.hbm %s904_s2, 128 }
 0x169   : > { %p640_p4 = scmp.ne.s32.totalorder %s832_s20, %s639_s4  ;;  %p644_p9 = scmp.lt.s32.totalorder %s832_s20, %s904_s2 }
 0x16a   : > { %p645_p10 = scmp.lt.s32.totalorder %s643_s8, %s639_s4 }
 0x16b   : > { %p641_p7 = pnand %p640_p4, %p785_p5 }
 0x16c   : > { %p646_p11 = por %p645_p10, %p644_p9 }
 0x16d   : > { %p642_p8 = pneg %p641_p7 }
 0x16f   : > { %p647_p12 = pnand %p646_p11, %p642_p8 }
 0x171   : > { %650 = shalt.err (!%p647_p12)
}
 0x172   : > { %563 = dma.vmem_to_hbm [thread:$0]  (%p785_p5), %s834_s9, 64, %s832_s20, %s415_s26  }
 0x173   : > { %s420_s19 = scalar_lea.sflag [#allocation5], %s825_s5  ;;  %s651_s16 = scalar_lea.vmem %s841_s11, 64 }
 0x174   : > { %p652_p13 = scmp.ne.s32.totalorder %s841_s11, %s651_s16  ;;  %s726_s24 = smov [#allocation4]  }
 0x175   : > { %s655_s27 = sshll.u32 %s726_s24, 4  ;;  %s656_s27 = int_to_ptr.vmem [resolvable:$false] %s655_s27 }
 0x176   : > { %p653_p0 = pnand %p652_p13, %p785_p5  ;;  %s657_s28 = scalar_lea.vmem %s656_s27, 128 }
 0x177   : > { %p658_p2 = scmp.lt.s32.totalorder %s841_s11, %s656_s27  ;;  %p659_p3 = scmp.lt.s32.totalorder %s657_s28, %s651_s16 }
 0x178   : > { %p654_p1 = pneg %p653_p0 }
 0x179   : > { %p660_p4 = por %p659_p3, %p658_p2 }
 0x17b   : > { %p661_p7 = pnand %p660_p4, %p654_p1 }
 0x17d   : > { %664 = shalt.err (!%p661_p7)
}
 0x17e   : > { %s665_s9 = scalar_lea.hbm %s839_s25, 64  ;;  %s669_s26 = scalar_lea.hbm %s905_s3, 128 }
 0x17f   : > { %p666_p8 = scmp.ne.s32.totalorder %s839_s25, %s665_s9  ;;  %p670_p11 = scmp.lt.s32.totalorder %s839_s25, %s905_s3 }
 0x180   : > { %p671_p12 = scmp.lt.s32.totalorder %s669_s26, %s665_s9 }
 0x181   : > { %p667_p9 = pnand %p666_p8, %p785_p5 }
 0x182   : > { %p672_p13 = por %p671_p12, %p670_p11 }
 0x183   : > { %p668_p10 = pneg %p667_p9 }
 0x185   : > { %p673_p0 = pnand %p672_p13, %p668_p10 }
 0x187   : > { %676 = shalt.err (!%p673_p0)
}
 0x188   : > { %564 = dma.vmem_to_hbm [thread:$0]  (%p785_p5), %s841_s11, 64, %s839_s25, %s420_s19  }
 0x189 PF: > { %p574_p1 = scmp.ge.s32.totalorder %s715_s15, 2  ;;  %s458_s4 = sand.u32 1, %s703_s12  }
 0x18a   : > { %s459_s6 = scalar_lea.sflag [#allocation3], %s458_s4 }
 0x18b   : > { %p568_p2 = pnand %p574_p1, %p789_p6 }
 0x18d   : > { %p569_p3 = pneg %p568_p2 }
 0x18f   : > { %694 = dma.done.wait (%p569_p3), %s459_s6, 64  }
 0x190   : > { %696 = vsyncadd (%p569_p3), %s459_s6, 4294967232  ;;  %s468_s7 = scalar_lea.sflag [#allocation5], %s458_s4 }
 0x191   : > { %698 = dma.done.wait (%p569_p3), %s468_s7, 64  }
 0x192   : > { %700 = vsyncadd (%p569_p3), %s468_s7, 4294967232  ;;  %p17_p5 = scmp.ge.s32.totalorder %s772_s18, 4   ;;  %s908_s12 = smov %s707_s13 }
 0x193   : > { %s909_s13 = smov %s711_s14  ;;  %s910_s14 = smov %s783_s21 }
 0x194   : > { %s911_s15 = smov %s772_s18  ;;  %19 = sbr.rel (!%p17_p5) target bundleno = 5 (0x5), region = 80 }
 0x199   :  { %473 = vsyncpa [#allocation3], 1 }
 0x19a   :  { %475 = vsyncpa [#allocation3 + $0x1], 1 }
 0x19b   :  { %476 = vsyncpa [#allocation5], 1 }
 0x19c   :  { %478 = vsyncpa [#allocation5 + $0x1], 1 }

</bundles_post_ra>
